<compile_context>
chip_gen: v7x
topology: tpu7x:2x2x1
jax: 0.10.0
libtpu: 0.0.40
codegen_flags: <defaults>
</compile_context>

<pallas_src>
import jax
import jax.numpy as jnp
from jax.experimental import pallas as pl
from jax.experimental.pallas import tpu as pltpu


def _choose_tile(dim, preferred, align):
    """Largest multiple of `align` that divides `dim` and is <= `preferred`;
    falls back to the full dim (always a legal Pallas block size)."""
    if dim % align != 0:
        return dim
    t = min(preferred, dim)
    t -= t % align
    while t >= align:
        if dim % t == 0:
            return t
        t -= align
    return dim


# ----------------------------------------------------------------------------
# Pallas kernel: per-channel affine  out[n, c, l] = x[n, c, l] * a[c] + b[c]
#   x block : (1, c_blk, l_blk)   -- L on the lane axis (lane-dense load/store)
#   a, b    : (c_blk, 1)          -- broadcast along lanes by the VPU
# ----------------------------------------------------------------------------
def _bn_apply_kernel(x_ref, a_ref, b_ref, o_ref):
    x = x_ref[0]            # (c_blk, l_blk)
    a = a_ref[...]          # (c_blk, 1)
    b = b_ref[...]          # (c_blk, 1)
    o_ref[0] = (x * a + b).astype(o_ref.dtype)


class BatchNorm1dGenerated:
    """JAX/Pallas re-implementation of pororo BatchNorm1dGenerated.forward (eval mode)."""

    def __init__(self, embedding_dim, bottleneck_dim, num_features, groups=1,
                 eps=1e-8, momentum=0.1, *, key=None):
        assert num_features % groups == 0
        self.num_features = num_features
        self.groups = groups
        self.eps = eps
        self.momentum = momentum
        self.features_per_group = num_features // groups

        # Buffers (eval-mode statistics).
        self.running_mean = jnp.zeros((num_features,), jnp.float32)
        self.running_var = jnp.ones((num_features,), jnp.float32)

        # Deterministic synthetic Linear parameters (stored transposed so the
        # wrapper computes y = x @ W + b, matching torch.nn.Linear semantics).
        if key is None:
            key = jax.random.PRNGKey(0)
        k = jax.random.split(key, 4)
        fg = self.features_per_group
        self.wb = 0.1 * jax.random.normal(k[0], (embedding_dim, bottleneck_dim), jnp.float32)
        self.bb = 0.1 * jax.random.normal(k[1], (bottleneck_dim,), jnp.float32)
        self.wa = 0.1 * jax.random.normal(k[2], (bottleneck_dim, 2 * fg), jnp.float32)
        self.ba = 0.1 * jax.random.normal(k[3], (2 * fg,), jnp.float32)

    # -- Pallas forward ------------------------------------------------------
    def __call__(self, generator_embedding, x):
        G = self.groups
        assert generator_embedding.shape[0] == G, (
            "Number of groups of a batchnorm layer must match the number of generators.")
        N, C, L = x.shape
        assert C == self.num_features
        fg = self.features_per_group

        # --- generated per-group scale / bias (tiny matmuls -> plain jnp) ----
        e = generator_embedding @ self.wb + self.bb          # (G, bottleneck)
        affine = e @ self.wa + self.ba                        # (G, 2*Fg)
        scale = affine[:, :fg].reshape(-1)                    # (C,)
        bias = affine[:, fg:].reshape(-1)                     # (C,)

        # --- fold running stats into one per-channel affine ------------------
        inv = 1.0 / jnp.sqrt(self.running_var + self.eps)     # (C,)
        a = (scale * inv).astype(jnp.float32).reshape(C, 1)
        b = (bias - self.running_mean * scale * inv).astype(jnp.float32).reshape(C, 1)

        # --- tiling: big lane-dense blocks, (8, 128)-aligned where possible --
        c_blk = _choose_tile(C, 256, 8)
        l_blk = _choose_tile(L, 2048, 128)
        grid = (C // c_blk, N, L // l_blk)   # channel blocks slowest -> a/b stay resident

        out = pl.pallas_call(
            _bn_apply_kernel,
            out_shape=jax.ShapeDtypeStruct((N, C, L), x.dtype),
            grid=grid,
            in_specs=[
                pl.BlockSpec((1, c_blk, l_blk), lambda ci, n, li: (n, ci, li)),
                pl.BlockSpec((c_blk, 1), lambda ci, n, li: (ci, 0)),
                pl.BlockSpec((c_blk, 1), lambda ci, n, li: (ci, 0)),
            ],
            out_specs=pl.BlockSpec((1, c_blk, l_blk), lambda ci, n, li: (n, ci, li)),
            compiler_params=pltpu.CompilerParams(
                dimension_semantics=("parallel", "parallel", "parallel")),
        )(x, a, b)
        return out

    # -- pure-JAX reference (mirrors PyTorch F.batch_norm, eval mode) --------
    def reference(self, generator_embedding, x):
        e = generator_embedding @ self.wb + self.bb
        affine = e @ self.wa + self.ba
        fg = self.features_per_group
        scale = affine[:, :fg].reshape(-1)
        bias = affine[:, fg:].reshape(-1)
        xn = (x - self.running_mean[None, :, None]) / jnp.sqrt(
            self.running_var + self.eps)[None, :, None]
        return xn * scale[None, :, None] + bias[None, :, None]


if __name__ == "__main__":
    embedding_dim, bottleneck_dim = 8, 4
    num_features, groups = 8, 2
    N, L = 2, 16

    key = jax.random.PRNGKey(0)
    kp, ke, kx, km, kv = jax.random.split(key, 5)

    module = BatchNorm1dGenerated(embedding_dim, bottleneck_dim, num_features,
                                  groups, eps=1e-8, momentum=0.1, key=kp)
    # Non-trivial running statistics so the normalization path is exercised.
    module.running_mean = 0.3 * jax.random.normal(km, (num_features,), jnp.float32)
    module.running_var = 0.5 + jax.random.uniform(kv, (num_features,), jnp.float32)

    generator_embedding = jax.random.normal(ke, (groups, embedding_dim), jnp.float32)
    x = jax.random.normal(kx, (N, num_features, L), jnp.float32)

    out = jax.block_until_ready(module(generator_embedding, x))

    ref = module.reference(generator_embedding, x)
    assert out.shape == ref.shape, (out.shape, ref.shape)
    max_err = float(jnp.max(jnp.abs(out - ref)))
    assert jnp.allclose(out, ref, atol=1e-4, rtol=1e-4), max_err

    print("KERNEL_OK")
</pallas_src>

<mosaic_0001>
module attributes {stable_mosaic.version = 11 : i64} {
  func.func @_bn_apply_kernel(%arg0: i32, %arg1: i32, %arg2: i32, %arg3: memref<1x8x16xf32, #tpu.memory_space<vmem>>, %arg4: memref<8x1xf32, #tpu.memory_space<vmem>>, %arg5: memref<8x1xf32, #tpu.memory_space<vmem>>, %arg6: memref<1x8x16xf32, #tpu.memory_space<vmem>>) attributes {dimension_semantics = [#tpu.dimension_semantics<parallel>, #tpu.dimension_semantics<parallel>, #tpu.dimension_semantics<parallel>], iteration_bounds = array<i64: 1, 2, 1>, scalar_prefetch = 0 : i64, scratch_operands = 0 : i64, tpu.core_type = #tpu.core_type<tc>, window_params = [{transform_indices = @transform_0, window_bounds = array<i64: 1, 8, 16>}, {transform_indices = @transform_1, window_bounds = array<i64: 8, 1>}, {transform_indices = @transform_2, window_bounds = array<i64: 8, 1>}, {transform_indices = @transform_3, window_bounds = array<i64: 1, 8, 16>}]} {
    %c0 = arith.constant 0 : index
    %c0_0 = arith.constant 0 : index
    %c0_1 = arith.constant 0 : index
    %0 = vector.load %arg3[%c0, %c0_0, %c0_1] : memref<1x8x16xf32, #tpu.memory_space<vmem>>, vector<1x8x16xf32>
    %1 = vector.shape_cast %0 : vector<1x8x16xf32> to vector<8x16xf32>
    %c0_2 = arith.constant 0 : index
    %c0_3 = arith.constant 0 : index
    %2 = vector.load %arg4[%c0_2, %c0_3] : memref<8x1xf32, #tpu.memory_space<vmem>>, vector<8x1xf32>
    %c0_4 = arith.constant 0 : index
    %c0_5 = arith.constant 0 : index
    %3 = vector.load %arg5[%c0_4, %c0_5] : memref<8x1xf32, #tpu.memory_space<vmem>>, vector<8x1xf32>
    %4 = vector.broadcast %2 : vector<8x1xf32> to vector<8x16xf32>
    %5 = arith.mulf %1, %4 : vector<8x16xf32>
    %6 = vector.broadcast %3 : vector<8x1xf32> to vector<8x16xf32>
    %7 = arith.addf %5, %6 : vector<8x16xf32>
    %c0_6 = arith.constant 0 : index
    %c0_7 = arith.constant 0 : index
    %c0_8 = arith.constant 0 : index
    %8 = vector.load %arg6[%c0_6, %c0_7, %c0_8] : memref<1x8x16xf32, #tpu.memory_space<vmem>>, vector<1x8x16xf32>
    %9 = vector.shape_cast %8 : vector<1x8x16xf32> to vector<8x16xf32>
    %10 = vector.shape_cast %7 : vector<8x16xf32> to vector<1x8x16xf32>
    tpu.vector_store %arg6[%c0_6, %c0_7, %c0_8], %10 {strides = array<i32>} : memref<1x8x16xf32, #tpu.memory_space<vmem>>, vector<1x8x16xf32>,
    return
  }
  func.func @transform_0(%arg0: i32, %arg1: i32, %arg2: i32) -> (i32, i32, i32) {
    %c0_i32 = arith.constant 0 : i32
    return %arg1, %arg0, %arg2 : i32, i32, i32
  }
  func.func @transform_1(%arg0: i32, %arg1: i32, %arg2: i32) -> (i32, i32) {
    %c0_i32 = arith.constant 0 : i32
    %c0_i32_0 = arith.constant 0 : i32
    return %arg0, %c0_i32 : i32, i32
  }
  func.func @transform_2(%arg0: i32, %arg1: i32, %arg2: i32) -> (i32, i32) {
    %c0_i32 = arith.constant 0 : i32
    %c0_i32_0 = arith.constant 0 : i32
    return %arg0, %c0_i32 : i32, i32
  }
  func.func @transform_3(%arg0: i32, %arg1: i32, %arg2: i32) -> (i32, i32, i32) {
    %c0_i32 = arith.constant 0 : i32
    return %arg1, %arg0, %arg2 : i32, i32, i32
  }
}

</mosaic_0001>

<bundles_post_ra>
// kernel: tpu_custom_call.1
= control target key start
LH: loop header
LB: loop body
LE: loop exit
PB: predicated region body
PF: predicated region fallthrough
CT: control target
= control target key end

     0   :  { %8 = vsyncpa [#allocation3], 0  ;;  %s676_s0 = inlined_call_operand.vmem [shape: f32[2,8,16], index: 0, kind: input, shape index: {}]   ;;  %s677_s1 = inlined_call_operand.vmem [shape: f32[8,1], index: 1, kind: input, shape index: {}]   ;;  %s678_s2 = inlined_call_operand.vmem [shape: f32[8,1], index: 2, kind: input, shape index: {}]   ;;  %s679_s3 = inlined_call_operand.hbm [shape: f32[2,8,16], index: 3, kind: output, shape index: {}]  }
   0x1   :  { %10 = vsyncpa [#allocation3 + $0x1], 0  ;;  %s558_s12 = smov 0   ;;  %s560_s13 = smov 0  }
   0x2   :  { %s562_s14 = smov 0   ;;  %s564_s15 = smov 0  }
   0x3   :  { %s566_s16 = smov 0   ;;  %s568_s17 = smov 0  }
   0x4 LB: > { %s386_s18 = sadd.s32 4294967295, %s534_s17   ;;  %s387_s19 = sadd.s32 4294967294, %s534_s17   ;;  %s534_s17 = sphi %s568_s17, %s16_s17   ;;  %s530_s16 = sphi %s566_s16, %s686_s16   ;;  %s526_s15 = sphi %s564_s15, %s685_s15   ;;  %s522_s14 = sphi %s562_s14, %s684_s14   ;;  %s518_s13 = sphi %s560_s13, %s683_s13   ;;  %s514_s12 = sphi %s558_s12, %s682_s12  }
   0x5   : > { %s31_s20 = sadd.s32 1, %s530_s16  ;;  %s128_s21 = sadd.s32 1, %s522_s14 }
   0x6   : > { %p33_p0 = scmp.ge.s32.totalorder %s31_s20, 2  ;;  %p138_p1 = scmp.ne.s32.totalorder %s522_s14, %s518_s13 }
   0x7   : > { %p139_p2 = scmp.eq.s32.totalorder %s386_s18, 1  ;;  %p144_p3 = scmp.ne.s32.totalorder %s518_s13, %s514_s12 }
   0x8   : > { %s688_s20 = smov (%p33_p0, %s31_s20), 0  ;;  %p145_p5 = scmp.eq.s32.totalorder %s387_s19, 1 }
   0x9   : > { %p598_p4 = por %p139_p2, %p138_p1  ;;  %s121_s23 = ssub.s32 %s530_s16, %s688_s20 }
   0xa   : > { %p392_p6 = scmp.ge.s32.totalorder %s534_s17, 1  ;;  %p126_p7 = scmp.eq.s32.totalorder %s121_s23, 0 }
   0xb   : > { %p605_p8 = por %p145_p5, %p144_p3  ;;  %p190_p9 = scmp.lt.s32.totalorder %s534_s17, 3 }
   0xc   : > { %s611_s25 = scalar_select %p126_p7, %s522_s14, %s128_s21  }
   0xd   : > { %p191_p10 = pnand %p392_p6, %p190_p9 }
   0xe   : > { %v246_v0 = vld [vmem:[%s677_s1] sm:$0xff] (!%p191_p10)  ;;  %v536_v1 = vmov (!%p191_p10), 0   ;;  %p227_p11 = scmp.lt.s32.totalorder (!%p191_p10), %s526_s15, 1  ;;  %s224_s4 = sand.u32 (!%p191_p10), 1, %s518_s13   ;;  %vm260_vm0 = vcmask (!%p191_p10), 130048  }
   0xf   : > { %194 = sbr.rel (%p191_p10) target bundleno = 164 (0xa4), region = 32  ;;  %455 = vset.pattern.permute.xlu0 (!%p191_p10), %v536_v1  ;;  %v247_v2 = vld [vmem:[%s678_s2] sm:$0xff] (!%p191_p10)  ;;  %s393_s6 = sshll.u32 (!%p191_p10), %s224_s4, 3 }
  0x10   : > { %250 = vperm.xlu0 (!%p191_p10), %455, %v246_v0   ;;  %s396_s10 = sshll.u32 (!%p191_p10), %s526_s15, 7  ;;  %s226_s11 = scalar_lea.vmem (!%p191_p10), [#allocation2], %s393_s6 }
  0x11   : > { %s278_s18 = sshll.u32 (!%p191_p10), %s226_s11, 4  ;;  %s629_s23 = scalar_lea.hbm (!%p191_p10), %s679_s3, %s396_s10  ;;  %s631_s18 = int_to_ptr.vmem [resolvable:$true] %s278_s18 }
  0x12   : > { %s263_s26 = scalar_lea.sflag (!%p191_p10), [#allocation3], %s224_s4  ;;  %s456_s27 = scalar_lea.vmem (!%p191_p10), %s631_s18, 128 }
  0x13   : > { %p457_p12 = scmp.ne.s32.totalorder (!%p191_p10), %s631_s18, %s456_s27 }
  0x14   : > { %256 = vperm.xlu0 (!%p191_p10), %455, %v247_v2  }
  0x15   : > { %p458_p13 = pnand (!%p191_p10), %p457_p12, %p598_p4 }
  0x16   : > { %s228_s30 = scalar_select %p227_p11, %s526_s15, 1 }
  0x17   : > { %p459_p0 = pneg %p458_p13  ;;  %s537_s15 = smov [#allocation2]  }
  0x18   : > { %s394_s5 = sshll.u32 %s228_s30, 3  ;;  %s460_s28 = sshll.u32 %s537_s15, 4  ;;  %s461_s28 = int_to_ptr.vmem [resolvable:$false] %s460_s28 }
  0x19   : > { %s236_s9 = scalar_lea.vmem %s676_s0, %s394_s5  ;;  %s462_s29 = scalar_lea.vmem %s461_s28, 256 }
  0x1a   : > { %v245_v4 = vld [vmem:[%s236_s9] sm:$0xff]  ;;  %p463_p1 = scmp.lt.s32.totalorder %s631_s18, %s461_s28  ;;  %p464_p2 = scmp.lt.s32.totalorder %s462_s29, %s456_s27 }
  0x1c   : > { %p465_p3 = por %p464_p2, %p463_p1 }
  0x1e   : > { %p466_p5 = pnand %p465_p3, %p459_p0 }
  0x8f   : > { %v251_v3 = vpop.permute.xlu0 %250 }
  0x90   : > { %v253_v5 = vmul.f32 %v251_v3, %v245_v4 }
  0x93   : > { %v257_v6 = vpop.permute.xlu0 %256 }
  0x94   : > { %v259_v7 = vadd.f32 %v257_v6, %v253_v5 }
  0x96   : > { %261 = vst.msk [vmem:[%s226_s11] sm:$0xff] %vm260_vm0, %v259_v7 }
  0x97   : > { %469 = shalt.err (!%p466_p5)
}
  0x98   : > { %s470_s30 = scalar_lea.hbm %s629_s23, 128  ;;  %s474_s6 = scalar_lea.hbm %s679_s3, 256 }
  0x99   : > { %p471_p6 = scmp.ne.s32.totalorder %s629_s23, %s470_s30  ;;  %p475_p10 = scmp.lt.u32.totalorder %s629_s23, %s679_s3 }
  0x9a   : > { %p476_p11 = scmp.lt.u32.totalorder %s474_s6, %s470_s30  ;;  %p478_p13 = scmp.lt.u32.totalorder %s470_s30, %s629_s23 }
  0x9b   : > { %p472_p7 = pnand %p471_p6, %p598_p4 }
  0x9c   : > { %p477_p12 = por %p476_p11, %p475_p10 }
  0x9d   : > { %p473_p9 = pneg %p472_p7 }
  0x9e   : > { %p479_p0 = por %p478_p13, %p477_p12 }
  0xa0   : > { %p480_p1 = pnand %p479_p0, %p473_p9 }
  0xa2   : > { %483 = shalt.err (!%p480_p1)
}
  0xa3   : > { %399 = dma.vmem_to_hbm [thread:$0]  (%p598_p4), %s631_s18, 128, %s629_s23, %s263_s26  }
  0xa4 PF: > { %p405_p2 = scmp.ge.s32.totalorder %s534_s17, 2  ;;  %s290_s9 = sand.u32 1, %s514_s12  }
  0xa5   : > { %s291_s10 = scalar_lea.sflag [#allocation3], %s290_s9 }
  0xa6   : > { %p402_p3 = pnand %p405_p2, %p605_p8 }
  0xa8   : > { %509 = dma.done.wait (!%p402_p3), %s291_s10, 128  }
  0xa9   : > { %511 = vsyncadd (!%p402_p3), %s291_s10, 4294967168  ;;  %s16_s17 = sadd.s32 1, %s534_s17   ;;  %s682_s12 = smov %s518_s13 }
  0xaa   : > { %p13_p5 = scmp.ge.s32.totalorder %s16_s17, 4   ;;  %s683_s13 = smov %s522_s14 }
  0xab   : > { %s684_s14 = smov %s611_s25  ;;  %s685_s15 = smov %s530_s16 }
  0xac   : > { %s686_s16 = smov %s688_s20  ;;  %15 = sbr.rel (!%p13_p5) target bundleno = 4 (0x4), region = 73 }
  0xb3   :  { %296 = vsyncpa [#allocation3], 1 }
  0xb4   :  { %298 = vsyncpa [#allocation3 + $0x1], 1 }

</bundles_post_ra>
